<compile_context>
chip_gen: v5e
topology: v5e:2x2
jax: 0.10.0
libtpu: 0.0.40
codegen_flags: <defaults>
</compile_context>

<pallas_src>
import functools

import jax
import jax.numpy as jnp
from jax.experimental import pallas as pl
from jax.experimental.pallas import tpu as pltpu


def _round_up(x, m):
    return ((x + m - 1) // m) * m


def _embedding_sum_kernel(idx_ref, tab_ref, out_ref, *, v_pad):
    # idx_ref: (Bt, F) int32   -- this batch tile's feature indices
    # tab_ref: (K_pad, D_pad) float32 -- all F tables flattened & zero-padded
    # out_ref: (Bt, D_pad) float32
    bt, num_feat = idx_ref.shape
    k_pad, _ = tab_ref.shape

    idx = idx_ref[...]                                               # (Bt, F)
    # Flat row offsets into the flattened table: row = f * v_pad + idx[:, f].
    offs = idx + jax.lax.broadcasted_iota(jnp.int32, (bt, num_feat), 1) * v_pad

    # Single vectorized one-hot over the flattened F*V axis (pure VPU compare
    # + one sublane reduce); per-feature ranges are disjoint, so the sum over
    # the feature axis is an exact 0/1 multi-hot with F ones per row.
    k_iota = jax.lax.broadcasted_iota(jnp.int32, (bt, num_feat, k_pad), 2)
    onehot = jnp.sum((offs[:, :, None] == k_iota).astype(jnp.float32), axis=1)

    # One fused MXU matmul replaces F separate gathers / tiny matmuls.
    # Tables stay float32 to match PyTorch nn.Embedding numerics exactly.
    out_ref[...] = jnp.dot(onehot, tab_ref[...],
                           preferred_element_type=jnp.float32)


def embedding_mlp_forward(indices, tables, *, batch_tile=256):
    """Forward pass of USAANR_Embedding_MLP.

    indices: (B, F) integer array, column f holds indices into tables[f].
    tables:  list of F float32 arrays, tables[f] has shape (vocab_f, D).
    returns: (B, D) float32 = sum_f tables[f][indices[:, f]].
    """
    B, F = indices.shape
    assert len(tables) == F
    D = tables[0].shape[1]

    # ---- Lane / sublane friendly padding (all padding is zero) -----------
    D_pad = _round_up(D, 128)                       # lane-dense output & table
    V_pad = _round_up(max(t.shape[0] for t in tables), 8)
    K_pad = _round_up(F * V_pad, 128)               # MXU contraction dim

    flat = jnp.zeros((K_pad, D_pad), dtype=jnp.float32)
    for f, t in enumerate(tables):
        flat = flat.at[f * V_pad: f * V_pad + t.shape[0], :D].set(
            t.astype(jnp.float32))

    # ---- Batch tiling: pipelined, "parallel" grid axis --------------------
    Bt = _round_up(min(batch_tile, _round_up(B, 8)), 8)
    B_pad = _round_up(B, Bt)
    idx = jnp.zeros((B_pad, F), dtype=jnp.int32).at[:B].set(
        indices.astype(jnp.int32))

    kernel = functools.partial(_embedding_sum_kernel, v_pad=V_pad)
    out = pl.pallas_call(
        kernel,
        out_shape=jax.ShapeDtypeStruct((B_pad, D_pad), jnp.float32),
        grid_spec=pl.GridSpec(
            grid=(B_pad // Bt,),
            in_specs=[
                # Per-step batch tile of indices.
                pl.BlockSpec((Bt, F), lambda i: (i, 0)),
                # Flattened table: same block every step -> VMEM resident.
                pl.BlockSpec((K_pad, D_pad), lambda i: (0, 0)),
            ],
            out_specs=pl.BlockSpec((Bt, D_pad), lambda i: (i, 0)),
        ),
        compiler_params=pltpu.CompilerParams(
            dimension_semantics=("parallel",)),
    )(idx, flat)

    return out[:B, :D]


if __name__ == "__main__":
    key = jax.random.PRNGKey(0)

    # Small shapes consistent with the module's forward.
    B = 8                          # batch
    D = 32                         # feature_size
    feat_uniques = [5, 7, 3, 9]    # len(DF[col].unique()) per feature column
    F = len(feat_uniques)
    vocab_sizes = [u + 1 for u in feat_uniques]   # nn.Embedding(u + 1, D)

    # Deterministic per-feature embedding tables.
    tables = []
    for vs in vocab_sizes:
        key, sub = jax.random.split(key)
        tables.append(jax.random.normal(sub, (vs, D), dtype=jnp.float32))

    # Deterministic input indices X: (B, F), each column within its vocab.
    cols = []
    for vs in vocab_sizes:
        key, sub = jax.random.split(key)
        cols.append(jax.random.randint(sub, (B,), 0, vs, dtype=jnp.int32))
    X = jnp.stack(cols, axis=1)                   # (B, F) int32

    out = embedding_mlp_forward(X, tables)
    out = jax.block_until_ready(out)

    # Pure-JAX reference: sum over per-feature gathers.
    ref = jnp.zeros((B, D), dtype=jnp.float32)
    for f in range(F):
        ref = ref + tables[f][X[:, f]]

    assert out.shape == (B, D)
    assert jnp.allclose(out, ref, atol=1e-5, rtol=1e-5)

    print("KERNEL_OK")
</pallas_src>

<mosaic_0001>
module attributes {stable_mosaic.version = 11 : i64} {
  func.func @_embedding_sum_kernel(%arg0: i32, %arg1: memref<8x4xi32, #tpu.memory_space<vmem>>, %arg2: memref<128x128xf32, #tpu.memory_space<vmem>>, %arg3: memref<8x128xf32, #tpu.memory_space<vmem>>) attributes {dimension_semantics = [#tpu.dimension_semantics<parallel>], iteration_bounds = array<i64: 1>, scalar_prefetch = 0 : i64, scratch_operands = 0 : i64, tpu.core_type = #tpu.core_type<tc>, window_params = [{transform_indices = @transform_0, window_bounds = array<i64: 8, 4>}, {pipeline_mode = #tpu.pipeline_mode<synchronous>, transform_indices = @transform_1, window_bounds = array<i64: 128, 128>}, {transform_indices = @transform_2, window_bounds = array<i64: 8, 128>}]} {
    %c0 = arith.constant 0 : index
    %c0_0 = arith.constant 0 : index
    %0 = vector.load %arg1[%c0, %c0_0] : memref<8x4xi32, #tpu.memory_space<vmem>>, vector<8x4xi32>
    %1 = tpu.iota {dimensions = array<i32: 1>} : vector<8x4xi32>
    %c16_i32 = arith.constant 16 : i32
    %2 = vector.broadcast %c16_i32 : i32 to vector<8x4xi32>
    %3 = arith.muli %1, %2 : vector<8x4xi32>
    %4 = arith.addi %0, %3 : vector<8x4xi32>
    %5 = tpu.iota {dimensions = array<i32: 2>} : vector<8x4x128xi32>
    %6 = vector.shape_cast %4 : vector<8x4xi32> to vector<8x4x1xi32>
    %7 = vector.broadcast %6 : vector<8x4x1xi32> to vector<8x4x128xi32>
    %8 = arith.cmpi eq, %7, %5 : vector<8x4x128xi32>
    %9 = arith.extui %8 : vector<8x4x128xi1> to vector<8x4x128xi32>
    %10 = arith.sitofp %9 : vector<8x4x128xi32> to vector<8x4x128xf32>
    %cst = arith.constant dense<0.000000e+00> : vector<8x128xf32>
    %11 = vector.multi_reduction <add>, %10, %cst [1] : vector<8x4x128xf32> to vector<8x128xf32>
    %c0_1 = arith.constant 0 : index
    %c0_2 = arith.constant 0 : index
    %12 = vector.load %arg2[%c0_1, %c0_2] : memref<128x128xf32, #tpu.memory_space<vmem>>, vector<128x128xf32>
    %cst_3 = arith.constant dense<0.000000e+00> : vector<8x128xf32>
    %13 = tpu.matmul %11, %12, %cst_3 {dimension_numbers = #tpu.dot_dimension_numbers<[1], [0], [0], [1], [0, 0, 1, 1], [], []>} : vector<8x128xf32>, vector<128x128xf32>, vector<8x128xf32> -> vector<8x128xf32>
    %c0_4 = arith.constant 0 : index
    %c0_5 = arith.constant 0 : index
    %14 = vector.load %arg3[%c0_4, %c0_5] : memref<8x128xf32, #tpu.memory_space<vmem>>, vector<8x128xf32>
    tpu.vector_store %arg3[%c0_4, %c0_5], %13 {strides = array<i32>} : memref<8x128xf32, #tpu.memory_space<vmem>>, vector<8x128xf32>,
    return
  }
  func.func @transform_0(%arg0: i32) -> (i32, i32) {
    %c0_i32 = arith.constant 0 : i32
    %c0_i32_0 = arith.constant 0 : i32
    return %arg0, %c0_i32 : i32, i32
  }
  func.func @transform_1(%arg0: i32) -> (i32, i32) {
    %c0_i32 = arith.constant 0 : i32
    %c0_i32_0 = arith.constant 0 : i32
    %c0_i32_1 = arith.constant 0 : i32
    return %c0_i32, %c0_i32_0 : i32, i32
  }
  func.func @transform_2(%arg0: i32) -> (i32, i32) {
    %c0_i32 = arith.constant 0 : i32
    %c0_i32_0 = arith.constant 0 : i32
    return %arg0, %c0_i32 : i32, i32
  }
}

</mosaic_0001>

<bundles_post_ra>
// kernel: tpu_custom_call.1
= control target key start
LH: loop header
LB: loop body
LE: loop exit
PB: predicated region body
PF: predicated region fallthrough
CT: control target
= control target key end

     0   :  { %7 = vsyncpa [#allocation3], 0  ;;  %s363_s0 = inlined_call_operand.vmem [shape: s32[8,4], index: 0, kind: input, shape index: {}]   ;;  %s364_s1 = inlined_call_operand.hbm [shape: f32[128,128], index: 1, kind: input, shape index: {}]   ;;  %s365_s2 = inlined_call_operand.hbm [shape: f32[8,128], index: 2, kind: output, shape index: {}]  }
   0x1   :  { %8 = vsyncpa [#allocation4], 0  ;;  %s15_s11 = sshll.u32 %s364_s1, 4  ;;  %s315_s12 = smov [#allocation2]   ;;  %s16_s11 = int_to_ptr.hbm [resolvable:$true] %s15_s11 }
   0x2   :  { %s17_s13 = sshll.u32 %s315_s12, 4  ;;  %s316_s14 = smov 128   ;;  %s18_s13 = int_to_ptr.vmem [resolvable:$true] %s17_s13 }
   0x3   :  { %s317_s15 = smov 8  }
   0x4   :  { %23 = dma.hbm_to_vmem [thread:$0]  %s16_s11, 2048, %s18_s13, [#allocation3], %s316_s14, %s316_s14, %s317_s15  }
   0x5   :  { %311 = dma.done.wait [#allocation3], 2048  }
   0x6   :  { %312 = vsyncadd [#allocation3], 4294965248  ;;  %v29_v0 = vlaneseq  ;;  %v28_v4 = vld [vmem:[%s363_s0] sm:$0xff]  ;;  %v185_v14 = vld [vmem:[#allocation2 + $0x78] sm:$0xff]  ;;  %vm113_vm1 = vcmask 1043456   ;;  %v318_v31 = vmov 0.0  }
   0x7   :  { %209 = vmatpush.msra.mxu0 %v185_v14  ;;  %v184_v15 = vld [vmem:[#allocation2 + $0x70] sm:$0xff]  ;;  %v183_v16 = vld [vmem:[#allocation2 + $0x68] sm:$0xff]  ;;  %v182_v17 = vld [vmem:[#allocation2 + $0x60] sm:$0xff]  ;;  %vm194_vm9 = vcmask 1041409   ;;  %vm196_vm10 = vcmask 1042434   ;;  %vm198_vm11 = vcmask 1043459  }
   0x8   :  { %v35_v1 = vshrl.u32 %v29_v0, 7  ;;  %v338_v2 = vand.u32 127, %v29_v0  ;;  %v181_v18 = vld [vmem:[#allocation2 + $0x58] sm:$0xff]  ;;  %v180_v19 = vld [vmem:[#allocation2 + $0x50] sm:$0xff]  ;;  %v179_v20 = vld [vmem:[#allocation2 + $0x48] sm:$0xff]  ;;  %vm200_vm12 = vcmask 1044484  }
   0x9   :  { %210 = vmatpush.msra.mxu0 %v184_v15  ;;  %v178_v21 = vld [vmem:[#allocation2 + $0x40] sm:$0xff]  ;;  %v177_v22 = vld [vmem:[#allocation2 + $0x38] sm:$0xff]  ;;  %v176_v24 = vld [vmem:[#allocation2 + $0x30] sm:$0xff]  ;;  %vm202_vm13 = vcmask 1045509   ;;  %vm204_vm14 = vcmask 1046534   ;;  %vm206_vm15 = vcmask 1047559  }
   0xa   :  { %261 = vset.pattern.permute.xlu1 %v35_v1  ;;  %260 = vset.pattern.permute.xlu0 %v35_v1  ;;  %v31_v3 = vmul.u32 16, %v338_v2  ;;  %v175_v25 = vld [vmem:[#allocation2 + $0x28] sm:$0xff]  ;;  %v174_v26 = vld [vmem:[#allocation2 + $0x20] sm:$0xff]  ;;  %v173_v27 = vld [vmem:[#allocation2 + $0x18] sm:$0xff]  ;;  %s319_s0 = smov [#allocation5]   ;;  %s237_s20 = sshll.u32 %s365_s2, 4  ;;  %s238_s20 = int_to_ptr.hbm [resolvable:$true] %s237_s20 }
   0xb   :  { %262 = vset.pattern.permute.xlu2 %v35_v1  ;;  %211 = vmatpush.msra.mxu0 %v183_v16  ;;  %v172_v28 = vld [vmem:[#allocation2 + $0x10] sm:$0xff]  ;;  %v171_v29 = vld [vmem:[#allocation2 + $0x8] sm:$0xff]  ;;  %v170_v33 = vld [vmem:[#allocation2] sm:$0xff]  ;;  %s235_s17 = sshll.u32 %s319_s0, 4  ;;  %s236_s17 = int_to_ptr.vmem [resolvable:$true] %s235_s17 }
   0xc   :  { %v32_v5 = vadd.s32 %v31_v3, %v28_v4 }
   0xd   :  { %212 = vmatpush.msra.mxu0 %v182_v17 }
   0xe   :  { %v47_v6 = vperm.slane %v32_v5, 2  ;;  %v33_v7 = vperm.slane %v32_v5, 0  ;;  %v61_v8 = vperm.slane %v32_v5, 4  ;;  %v54_v9 = vperm.slane %v32_v5, 3 }
   0xf   :  { %v40_v10 = vperm.slane %v32_v5, 1  ;;  %v68_v11 = vperm.slane %v32_v5, 5  ;;  %v82_v12 = vperm.slane %v32_v5, 7  ;;  %v75_v13 = vperm.slane %v32_v5, 6  ;;  %213 = vmatpush.msra.mxu0 %v181_v18 }
  0x11   :  { %214 = vmatpush.msra.mxu0 %v180_v19 }
  0x12   :  { %52 = vperm.xlu1 %261, %v47_v6   ;;  %38 = vperm.xlu0 %260, %v33_v7  }
  0x13   :  { %66 = vperm.xlu2 %262, %v61_v8   ;;  %215 = vmatpush.msra.mxu0 %v179_v20 }
  0x15   :  { %216 = vmatpush.msra.mxu0 %v178_v21 }
  0x17   :  { %217 = vmatpush.msra.mxu0 %v177_v22 }
  0x19   :  { %218 = vmatpush.msra.mxu0 %v176_v24 }
  0x1a   :  { %59 = vperm.xlu1 %261, %v54_v9   ;;  %45 = vperm.xlu0 %260, %v40_v10  }
  0x1b   :  { %73 = vperm.xlu2 %262, %v68_v11   ;;  %219 = vmatpush.msra.mxu0 %v175_v25 }
  0x1d   :  { %220 = vmatpush.msra.mxu0 %v174_v26 }
  0x1f   :  { %221 = vmatpush.msra.mxu0 %v173_v27 }
  0x21   :  { %222 = vmatpush.msra.mxu0 %v172_v28 }
  0x22   :  { %87 = vperm.xlu1 %261, %v82_v12   ;;  %80 = vperm.xlu0 %260, %v75_v13  }
  0x23   :  { %223 = vmatpush.msra.mxu0 %v171_v29 }
  0x25   :  { %224 = vmatpush.msra.mxu0 %v170_v33 }
  0x6d   :  { %v67_v23 = vpop.permute.xlu2 %66 }
  0x6e   :  { %vm93_vm0 = vcmp.eq.s32.totalorder %v67_v23, %v338_v2 }
  0x6f   :  { %v251_v32 = vsel %vm93_vm0, 1.0, %v318_v31 }
  0x70   :  { %v142_v36 = vsel %vm113_vm1, %v251_v32, 0.0 }
  0x71   :  { %v143_v42 = vrot.slane %v142_v36, 4 }
  0x73   :  { %v144_v48 = vadd.f32 %v143_v42, %v142_v36 }
  0x75   :  { %v74_v30 = vpop.permute.xlu2 %73  ;;  %v145_v58 = vrot.slane %v144_v48, 2 }
  0x76   :  { %vm94_vm2 = vcmp.eq.s32.totalorder %v74_v30, %v338_v2 }
  0x77   :  { %v252_v41 = vsel %vm94_vm2, 1.0, %v318_v31  ;;  %v146_v3 = vadd.f32 %v145_v58, %v144_v48 }
  0x78   :  { %v149_v46 = vsel %vm113_vm1, %v252_v41, 0.0 }
  0x79   :  { %v150_v52 = vrot.slane %v149_v46, 4  ;;  %v147_v21 = vrot.slane %v146_v3, 1 }
  0x7b   :  { %v151_v62 = vadd.f32 %v150_v52, %v149_v46  ;;  %v148_v33 = vadd.f32 %v147_v21, %v146_v3 }
  0x7d   :  { %v152_v9 = vrot.slane %v151_v62, 2 }
  0x7f   :  { %v153_v22 = vadd.f32 %v152_v9, %v151_v62 }
  0x84   :  { %v53_v34 = vpop.permute.xlu1 %52  ;;  %v39_v35 = vpop.permute.xlu0 %38 }
  0x85   :  { %vm91_vm3 = vcmp.eq.s32.totalorder %v53_v34, %v338_v2  ;;  %vm89_vm4 = vcmp.eq.s32.totalorder %v39_v35, %v338_v2 }
  0x86   :  { %v249_v37 = vsel %vm91_vm3, 1.0, %v318_v31  ;;  %v247_v38 = vsel %vm89_vm4, 1.0, %v318_v31 }
  0x87   :  { %v128_v39 = vsel %vm113_vm1, %v249_v37, 0.0  ;;  %v114_v40 = vsel %vm113_vm1, %v247_v38, 0.0 }
  0x88   :  { %v129_v43 = vrot.slane %v128_v39, 4  ;;  %v115_v44 = vrot.slane %v114_v40, 4 }
  0x8a   :  { %v116_v45 = vadd.f32 %v115_v44, %v114_v40  ;;  %v130_v47 = vadd.f32 %v129_v43, %v128_v39 }
  0x8c   :  { %v60_v49 = vpop.permute.xlu1 %59  ;;  %v46_v50 = vpop.permute.xlu0 %45  ;;  %v117_v51 = vrot.slane %v116_v45, 2  ;;  %v131_v55 = vrot.slane %v130_v47, 2 }
  0x8d   :  { %vm92_vm5 = vcmp.eq.s32.totalorder %v60_v49, %v338_v2  ;;  %vm90_vm6 = vcmp.eq.s32.totalorder %v46_v50, %v338_v2 }
  0x8e   :  { %v250_v53 = vsel %vm92_vm5, 1.0, %v318_v31  ;;  %v248_v54 = vsel %vm90_vm6, 1.0, %v318_v31  ;;  %v118_v61 = vadd.f32 %v117_v51, %v116_v45  ;;  %v132_v1 = vadd.f32 %v131_v55, %v130_v47 }
  0x8f   :  { %v135_v56 = vsel %vm113_vm1, %v250_v53, 0.0  ;;  %v121_v57 = vsel %vm113_vm1, %v248_v54, 0.0 }
  0x90   :  { %v136_v59 = vrot.slane %v135_v56, 4  ;;  %v122_v60 = vrot.slane %v121_v57, 4  ;;  %v119_v8 = vrot.slane %v118_v61, 1  ;;  %v133_v14 = vrot.slane %v132_v1, 1 }
  0x92   :  { %v137_v63 = vadd.f32 %v136_v59, %v135_v56  ;;  %v123_v0 = vadd.f32 %v122_v60, %v121_v57  ;;  %v120_v23 = vadd.f32 %v119_v8, %v118_v61  ;;  %v134_v26 = vadd.f32 %v133_v14, %v132_v1 }
  0x94   :  { %v138_v4 = vrot.slane %v137_v63, 2  ;;  %v124_v5 = vrot.slane %v123_v0, 2  ;;  %v88_v6 = vpop.permute.xlu1 %87  ;;  %v81_v7 = vpop.permute.xlu0 %80 }
  0x95   :  { %vm96_vm7 = vcmp.eq.s32.totalorder %v88_v6, %v338_v2  ;;  %vm95_vm8 = vcmp.eq.s32.totalorder %v81_v7, %v338_v2 }
  0x96   :  { %v139_v10 = vadd.f32 %v138_v4, %v137_v63  ;;  %v125_v11 = vadd.f32 %v124_v5, %v123_v0  ;;  %v254_v12 = vsel %vm96_vm7, 1.0, %v318_v31  ;;  %v253_v13 = vsel %vm95_vm8, 1.0, %v318_v31 }
  0x97   :  { %v163_v15 = vsel %vm113_vm1, %v254_v12, 0.0  ;;  %v156_v16 = vsel %vm113_vm1, %v253_v13, 0.0  ;;  %v154_v31 = vrot.slane %v153_v22, 1 }
  0x98   :  { %v140_v17 = vrot.slane %v139_v10, 1  ;;  %v126_v18 = vrot.slane %v125_v11, 1  ;;  %v164_v19 = vrot.slane %v163_v15, 4  ;;  %v157_v20 = vrot.slane %v156_v16, 4 }
  0x99   :  { %v155_v40 = vadd.f32 %v154_v31, %v153_v22 }
  0x9a   :  { %v127_v24 = vadd.f32 %v126_v18, %v125_v11  ;;  %v165_v2 = vadd.f32 %v164_v19, %v163_v15  ;;  %v158_v25 = vadd.f32 %v157_v20, %v156_v16  ;;  %v141_v27 = vadd.f32 %v140_v17, %v139_v10 }
  0x9c   :  { %v195_v28 = vsel %vm194_vm9, %v127_v24, %v120_v23  ;;  %v166_v29 = vrot.slane %v165_v2, 2  ;;  %v159_v30 = vrot.slane %v158_v25, 2 }
  0x9d   :  { %v197_v32 = vsel %vm196_vm10, %v134_v26, %v195_v28 }
  0x9e   :  { %v167_v34 = vadd.f32 %v166_v29, %v165_v2  ;;  %v160_v35 = vadd.f32 %v159_v30, %v158_v25  ;;  %v199_v36 = vsel %vm198_vm11, %v141_v27, %v197_v32 }
  0x9f   :  { %v201_v39 = vsel %vm200_vm12, %v148_v33, %v199_v36 }
  0xa0   :  { %v161_v37 = vrot.slane %v160_v35, 1  ;;  %v168_v38 = vrot.slane %v167_v34, 1  ;;  %v203_v43 = vsel %vm202_vm13, %v155_v40, %v201_v39 }
  0xa2   :  { %v162_v41 = vadd.f32 %v161_v37, %v160_v35  ;;  %v169_v42 = vadd.f32 %v168_v38, %v167_v34 }
  0xa4   :  { %v205_v44 = vsel %vm204_vm14, %v162_v41, %v203_v43 }
  0xa5   :  { %v207_v45 = vsel %vm206_vm15, %v169_v42, %v205_v44 }
  0xa6   :  { %225 = vmatmul.f32.vlgmr.msra.gmra.mxu0 %v207_v45 }
 0x123   :  { %v226_v46 = vpop.f32.mrf.mxu0 }
 0x124   :  { %229 = vst [vmem:[#allocation5] sm:$0xff] %v226_v46 }
 0x125   :  { %240 = dma.vmem_to_hbm [thread:$0]  %s236_s17, 128, %s238_s20, [#allocation4]  }
 0x126   :  { %313 = dma.done.wait [#allocation4], 128  }
 0x127   :  { %314 = vsyncadd [#allocation4], 4294967168 }
 0x128   :  { %245 = vsyncpa [#allocation3], 1 }
 0x129   :  { %246 = vsyncpa [#allocation4], 1 }

</bundles_post_ra>
